<compile_context>
chip_gen: v7x
topology: tpu7x:2x2x1
jax: 0.10.0
libtpu: 0.0.40
codegen_flags: <defaults>
</compile_context>

<pallas_src>
import functools

import jax
import jax.numpy as jnp
from jax.experimental import pallas as pl
from jax.experimental.pallas import tpu as pltpu


def _round_up(x, m):
    return (x + m - 1) // m * m


def _softplus(x):
    # -log_sigmoid(x) == softplus(-x).  Stable: max(x,0) + log(1+exp(-|x|));
    # exp/log run on the EUP, in f32 so the math is native on v5e as well.
    return jnp.maximum(x, 0.0) + jnp.log(1.0 + jnp.exp(-jnp.abs(x)))


def _skipgram_kernel(tgt_idx_ref, all_idx_ref, tgt_tbl_ref, ctx_tbl_t_ref,
                     partial_ref, *, batch_true):
    i = pl.program_id(0)

    tgt_idx = tgt_idx_ref[...]          # (TB, 1)    int32
    all_idx = all_idx_ref[...]          # (TB, 1+K)  int32  (col 0 = positive ctx)
    tgt_tbl = tgt_tbl_ref[...]          # (Vp, Dp)   bf16   whole-array VMEM resident
    ctx_tbl_t = ctx_tbl_t_ref[...]      # (Dp, Vp)   bf16   whole-array VMEM resident

    tb = tgt_idx.shape[0]
    n_sc = all_idx.shape[1]             # 1 + K score columns per sample
    vp = tgt_tbl.shape[0]

    # --- fused target-row gather: exact one-hot @ table on the MXU ----------
    vocab_iota = jax.lax.broadcasted_iota(jnp.int32, (tb, vp), 1)
    t_onehot = (vocab_iota == tgt_idx).astype(jnp.bfloat16)            # (TB, Vp)
    t = jnp.dot(t_onehot, tgt_tbl,
                preferred_element_type=jnp.float32)                    # (TB, Dp) f32

    # --- target vs every context row: MXU-native (TB,Dp)@(Dp,Vp) ------------
    # (t is exactly the bf16-rounded rows, so the bf16 cast is lossless.)
    scores = jnp.dot(t.astype(jnp.bfloat16), ctx_tbl_t,
                     preferred_element_type=jnp.float32)               # (TB, Vp) f32

    # --- extract the 1 positive + K negative scores (masked lane reductions),
    #     sign them, then one dense softplus pass over the (TB, 1+K) block ---
    signed_cols = []
    for j in range(n_sc):                       # n_sc is small & static
        idx_j = all_idx[:, j:j + 1]                                    # (TB, 1)
        s_j = jnp.sum(jnp.where(vocab_iota == idx_j, scores, 0.0),
                      axis=1, keepdims=True)                           # (TB, 1)
        signed_cols.append(-s_j if j == 0 else s_j)
    signed = jnp.concatenate(signed_cols, axis=1)                      # (TB, 1+K)
    # loss_row = softplus(-pos) + sum_k softplus(neg_k)
    loss_rows = jnp.sum(_softplus(signed), axis=1, keepdims=True)      # (TB, 1)

    # Mask padded batch rows so the final mean is unbiased.
    row = i * tb + jax.lax.broadcasted_iota(jnp.int32, (tb, 1), 0)
    loss_rows = jnp.where(row < batch_true, loss_rows, 0.0)

    # Per-tile partial sum into a lane-dense (8,128) block (value replicated);
    # distinct block per grid step -> the batch axis is truly "parallel".
    tile_sum = jnp.sum(loss_rows, axis=0, keepdims=True)               # (1, 1)
    partial_ref[...] = jnp.broadcast_to(tile_sum, (8, 128))


def skipgram_forward(target_words, context_words, negative_samples,
                     target_emb_table, context_emb_table, *, block_b=None):
    """Mirrors SkipGram_Model.forward; returns the scalar mean loss."""
    B = int(target_words.shape[0])
    V, D = target_emb_table.shape
    K = 0 if negative_samples is None else int(negative_samples.shape[1])
    n_sc = 1 + K

    # Lane-dense layout: pad BOTH table dims to multiples of 128.  Vp is the
    # lane dim of the one-hot / scores blocks and the gather contraction dim;
    # zero pad rows/cols are never selected, so numerics are unchanged.
    Dp = _round_up(D, 128)
    Vp = _round_up(V, 128)

    # bf16 MXU operands (f32 accumulation in-kernel); context table is
    # pre-transposed on the host so the score matmul is MXU-native.
    tgt_tbl = jnp.pad(target_emb_table.astype(jnp.bfloat16),
                      ((0, Vp - V), (0, Dp - D)))
    ctx_tbl_t = jnp.pad(context_emb_table.astype(jnp.bfloat16).T,
                        ((0, Dp - D), (0, Vp - V)))

    # Batch tile: keep the dominant live f32 temporaries (scores / one-hot /
    # per-column selects) within a few MiB so the kernel also fits v7x's
    # smaller (64 MiB physical / 32 MiB scoped) VMEM.  Cap at 256 rows.
    if block_b is None:
        bytes_per_row = (n_sc + 4) * Vp * 4
        block_b = max(8, min(256, (8 << 20) // max(bytes_per_row, 1)))
    block_b = _round_up(min(block_b, _round_up(B, 8)), 8)
    B_pad = _round_up(B, block_b)
    num_tiles = B_pad // block_b

    def pad_idx(x, width):
        x = x.reshape(B, width).astype(jnp.int32)
        return jnp.pad(x, ((0, B_pad - B), (0, 0)))

    tgt_idx = pad_idx(target_words, 1)
    if negative_samples is None:
        all_idx = pad_idx(context_words, 1)
    else:
        all_idx = jnp.concatenate(
            [pad_idx(context_words, 1), pad_idx(negative_samples, K)], axis=1)

    kernel = functools.partial(_skipgram_kernel, batch_true=B)

    # Rough VMEM budget: single-buffered bf16 tables + double-buffered index
    # tiles + live f32 temporaries; 2x headroom, clamped to a portable range.
    est = (2 * Vp * Dp * 2
           + 2 * block_b * (1 + n_sc) * 4
           + block_b * (n_sc + 4) * Vp * 4
           + block_b * Dp * 8)
    vmem_limit = int(min(max(2 * est, 32 << 20), 48 << 20))

    grid_spec = pltpu.PrefetchScalarGridSpec(
        num_scalar_prefetch=0,
        grid=(num_tiles,),
        in_specs=[
            pl.BlockSpec((block_b, 1), lambda i: (i, 0)),
            pl.BlockSpec((block_b, n_sc), lambda i: (i, 0)),
            # Whole-array VMEM residents: DMA'd once, NOT double-buffered.
            pl.BlockSpec(memory_space=pltpu.MemorySpace.VMEM),
            pl.BlockSpec(memory_space=pltpu.MemorySpace.VMEM),
        ],
        out_specs=pl.BlockSpec((8, 128), lambda i: (i, 0)),
    )

    partials = pl.pallas_call(
        kernel,
        grid_spec=grid_spec,
        out_shape=jax.ShapeDtypeStruct((num_tiles * 8, 128), jnp.float32),
        compiler_params=pltpu.CompilerParams(
            dimension_semantics=("parallel",),
            vmem_limit_bytes=vmem_limit),
    )(tgt_idx, all_idx, tgt_tbl, ctx_tbl_t)

    # One replicated partial sum per tile -> pick one element per tile.
    total = jnp.sum(partials.reshape(num_tiles, 8, 128)[:, 0, 0])
    return total / jnp.float32(B)


def skipgram_reference(target_words, context_words, negative_samples,
                       target_emb_table, context_emb_table):
    """Pure-JAX reference of the PyTorch forward for a sanity check."""
    t = jnp.take(target_emb_table, target_words, axis=0)
    c = jnp.take(context_emb_table, context_words, axis=0)
    pos = jax.nn.log_sigmoid(jnp.sum(t * c, axis=1))
    if negative_samples is None:
        neg = 0.0
    else:
        n = jnp.take(context_emb_table, negative_samples, axis=0)
        neg_score = jnp.einsum("bkd,bd->bk", n, t)
        neg = jnp.sum(jax.nn.log_sigmoid(-neg_score), axis=1)
    return jnp.mean(-(pos + neg))


if __name__ == "__main__":
    vocab_size = 50
    embedding_dim = 32
    batch = 8
    num_neg = 8
    initrange = 0.5 / embedding_dim

    key = jax.random.PRNGKey(0)
    k_tgt, k_ctx, k_tw, k_cw, k_ns = jax.random.split(key, 5)

    # nn.Embedding weights, uniform in (-initrange, initrange), f32.
    target_emb_table = jax.random.uniform(
        k_tgt, (vocab_size, embedding_dim), jnp.float32,
        minval=-initrange, maxval=initrange)
    context_emb_table = jax.random.uniform(
        k_ctx, (vocab_size, embedding_dim), jnp.float32,
        minval=-initrange, maxval=initrange)

    target_words = jax.random.randint(k_tw, (batch,), 0, vocab_size, jnp.int32)
    context_words = jax.random.randint(k_cw, (batch,), 0, vocab_size, jnp.int32)
    negative_samples = jax.random.randint(
        k_ns, (batch, num_neg), 0, vocab_size, jnp.int32)

    # With negative sampling (the main path).
    loss = skipgram_forward(target_words, context_words, negative_samples,
                            target_emb_table, context_emb_table)
    loss = jax.block_until_ready(loss)
    ref = skipgram_reference(target_words, context_words, negative_samples,
                             target_emb_table, context_emb_table)
    # Tolerance covers bf16 MXU operands (f32 accumulation).
    assert jnp.allclose(loss, ref, atol=2e-3, rtol=2e-3), (loss, ref)

    # negative_samples=None branch of the PyTorch forward.
    loss_pos = skipgram_forward(target_words, context_words, None,
                                target_emb_table, context_emb_table)
    loss_pos = jax.block_until_ready(loss_pos)
    ref_pos = skipgram_reference(target_words, context_words, None,
                                 target_emb_table, context_emb_table)
    assert jnp.allclose(loss_pos, ref_pos, atol=2e-3, rtol=2e-3), (loss_pos, ref_pos)

    print("KERNEL_OK")
</pallas_src>

<mosaic_0001>
module attributes {stable_mosaic.version = 11 : i64} {
  func.func @_skipgram_kernel(%arg0: i32, %arg1: memref<8x1xi32, #tpu.memory_space<vmem>>, %arg2: memref<8x9xi32, #tpu.memory_space<vmem>>, %arg3: memref<128x128xbf16, #tpu.memory_space<vmem>>, %arg4: memref<128x128xbf16, #tpu.memory_space<vmem>>, %arg5: memref<8x128xf32, #tpu.memory_space<vmem>>) attributes {dimension_semantics = [#tpu.dimension_semantics<parallel>], iteration_bounds = array<i64: 1>, scalar_prefetch = 0 : i64, scratch_operands = 0 : i64, tpu.core_type = #tpu.core_type<tc>, window_params = [{transform_indices = @transform_0, window_bounds = array<i64: 8, 1>}, {transform_indices = @transform_1, window_bounds = array<i64: 8, 9>}, {pipeline_mode = #tpu.pipeline_mode<synchronous>, transform_indices = @transform_2, window_bounds = array<i64: 128, 128>}, {pipeline_mode = #tpu.pipeline_mode<synchronous>, transform_indices = @transform_3, window_bounds = array<i64: 128, 128>}, {transform_indices = @transform_4, window_bounds = array<i64: 8, 128>}]} {
    %c0 = arith.constant 0 : index
    %c0_0 = arith.constant 0 : index
    %0 = vector.load %arg1[%c0, %c0_0] : memref<8x1xi32, #tpu.memory_space<vmem>>, vector<8x1xi32>
    %c0_1 = arith.constant 0 : index
    %c0_2 = arith.constant 0 : index
    %1 = vector.load %arg2[%c0_1, %c0_2] : memref<8x9xi32, #tpu.memory_space<vmem>>, vector<8x9xi32>
    %c0_3 = arith.constant 0 : index
    %c0_4 = arith.constant 0 : index
    %2 = vector.load %arg3[%c0_3, %c0_4] : memref<128x128xbf16, #tpu.memory_space<vmem>>, vector<128x128xbf16>
    %c0_5 = arith.constant 0 : index
    %c0_6 = arith.constant 0 : index
    %3 = vector.load %arg4[%c0_5, %c0_6] : memref<128x128xbf16, #tpu.memory_space<vmem>>, vector<128x128xbf16>
    %4 = tpu.iota {dimensions = array<i32: 1>} : vector<8x128xi32>
    %5 = vector.broadcast %0 : vector<8x1xi32> to vector<8x128xi32>
    %6 = arith.cmpi eq, %4, %5 : vector<8x128xi32>
    %7 = arith.extui %6 : vector<8x128xi1> to vector<8x128xi32>
    %8 = arith.sitofp %7 : vector<8x128xi32> to vector<8x128xf32>
    %9 = arith.truncf %8 : vector<8x128xf32> to vector<8x128xbf16>
    %cst = arith.constant dense<0.000000e+00> : vector<8x128xf32>
    %10 = tpu.matmul %9, %2, %cst {dimension_numbers = #tpu.dot_dimension_numbers<[1], [0], [0], [1], [0, 0, 1, 1], [], []>} : vector<8x128xbf16>, vector<128x128xbf16>, vector<8x128xf32> -> vector<8x128xf32>
    %11 = arith.truncf %10 : vector<8x128xf32> to vector<8x128xbf16>
    %cst_7 = arith.constant dense<0.000000e+00> : vector<8x128xf32>
    %12 = tpu.matmul %11, %3, %cst_7 {dimension_numbers = #tpu.dot_dimension_numbers<[1], [0], [0], [1], [0, 0, 1, 1], [], []>} : vector<8x128xbf16>, vector<128x128xbf16>, vector<8x128xf32> -> vector<8x128xf32>
    %13 = vector.extract_strided_slice %1 {offsets = [0, 0], sizes = [8, 1], strides = [1, 1]} : vector<8x9xi32> to vector<8x1xi32>
    %14 = vector.broadcast %13 : vector<8x1xi32> to vector<8x128xi32>
    %15 = arith.cmpi eq, %4, %14 : vector<8x128xi32>
    %cst_8 = arith.constant 0.000000e+00 : f32
    %16 = vector.broadcast %cst_8 : f32 to vector<8x128xf32>
    %17 = arith.select %15, %12, %16 : vector<8x128xi1>, vector<8x128xf32>
    %cst_9 = arith.constant dense<0.000000e+00> : vector<8xf32>
    %18 = vector.multi_reduction <add>, %17, %cst_9 [1] : vector<8x128xf32> to vector<8xf32>
    %19 = vector.shape_cast %18 : vector<8xf32> to vector<8x1xf32>
    %cst_10 = arith.constant 0.000000e+00 : f32
    %20 = vector.broadcast %cst_10 : f32 to vector<8x1xf32>
    %21 = arith.subf %20, %19 : vector<8x1xf32>
    %22 = vector.extract_strided_slice %1 {offsets = [0, 1], sizes = [8, 1], strides = [1, 1]} : vector<8x9xi32> to vector<8x1xi32>
    %23 = vector.broadcast %22 : vector<8x1xi32> to vector<8x128xi32>
    %24 = arith.cmpi eq, %4, %23 : vector<8x128xi32>
    %cst_11 = arith.constant 0.000000e+00 : f32
    %25 = vector.broadcast %cst_11 : f32 to vector<8x128xf32>
    %26 = arith.select %24, %12, %25 : vector<8x128xi1>, vector<8x128xf32>
    %cst_12 = arith.constant dense<0.000000e+00> : vector<8xf32>
    %27 = vector.multi_reduction <add>, %26, %cst_12 [1] : vector<8x128xf32> to vector<8xf32>
    %28 = vector.shape_cast %27 : vector<8xf32> to vector<8x1xf32>
    %29 = vector.extract_strided_slice %1 {offsets = [0, 2], sizes = [8, 1], strides = [1, 1]} : vector<8x9xi32> to vector<8x1xi32>
    %30 = vector.broadcast %29 : vector<8x1xi32> to vector<8x128xi32>
    %31 = arith.cmpi eq, %4, %30 : vector<8x128xi32>
    %cst_13 = arith.constant 0.000000e+00 : f32
    %32 = vector.broadcast %cst_13 : f32 to vector<8x128xf32>
    %33 = arith.select %31, %12, %32 : vector<8x128xi1>, vector<8x128xf32>
    %cst_14 = arith.constant dense<0.000000e+00> : vector<8xf32>
    %34 = vector.multi_reduction <add>, %33, %cst_14 [1] : vector<8x128xf32> to vector<8xf32>
    %35 = vector.shape_cast %34 : vector<8xf32> to vector<8x1xf32>
    %36 = vector.extract_strided_slice %1 {offsets = [0, 3], sizes = [8, 1], strides = [1, 1]} : vector<8x9xi32> to vector<8x1xi32>
    %37 = vector.broadcast %36 : vector<8x1xi32> to vector<8x128xi32>
    %38 = arith.cmpi eq, %4, %37 : vector<8x128xi32>
    %cst_15 = arith.constant 0.000000e+00 : f32
    %39 = vector.broadcast %cst_15 : f32 to vector<8x128xf32>
    %40 = arith.select %38, %12, %39 : vector<8x128xi1>, vector<8x128xf32>
    %cst_16 = arith.constant dense<0.000000e+00> : vector<8xf32>
    %41 = vector.multi_reduction <add>, %40, %cst_16 [1] : vector<8x128xf32> to vector<8xf32>
    %42 = vector.shape_cast %41 : vector<8xf32> to vector<8x1xf32>
    %43 = vector.extract_strided_slice %1 {offsets = [0, 4], sizes = [8, 1], strides = [1, 1]} : vector<8x9xi32> to vector<8x1xi32>
    %44 = vector.broadcast %43 : vector<8x1xi32> to vector<8x128xi32>
    %45 = arith.cmpi eq, %4, %44 : vector<8x128xi32>
    %cst_17 = arith.constant 0.000000e+00 : f32
    %46 = vector.broadcast %cst_17 : f32 to vector<8x128xf32>
    %47 = arith.select %45, %12, %46 : vector<8x128xi1>, vector<8x128xf32>
    %cst_18 = arith.constant dense<0.000000e+00> : vector<8xf32>
    %48 = vector.multi_reduction <add>, %47, %cst_18 [1] : vector<8x128xf32> to vector<8xf32>
    %49 = vector.shape_cast %48 : vector<8xf32> to vector<8x1xf32>
    %50 = vector.extract_strided_slice %1 {offsets = [0, 5], sizes = [8, 1], strides = [1, 1]} : vector<8x9xi32> to vector<8x1xi32>
    %51 = vector.broadcast %50 : vector<8x1xi32> to vector<8x128xi32>
    %52 = arith.cmpi eq, %4, %51 : vector<8x128xi32>
    %cst_19 = arith.constant 0.000000e+00 : f32
    %53 = vector.broadcast %cst_19 : f32 to vector<8x128xf32>
    %54 = arith.select %52, %12, %53 : vector<8x128xi1>, vector<8x128xf32>
    %cst_20 = arith.constant dense<0.000000e+00> : vector<8xf32>
    %55 = vector.multi_reduction <add>, %54, %cst_20 [1] : vector<8x128xf32> to vector<8xf32>
    %56 = vector.shape_cast %55 : vector<8xf32> to vector<8x1xf32>
    %57 = vector.extract_strided_slice %1 {offsets = [0, 6], sizes = [8, 1], strides = [1, 1]} : vector<8x9xi32> to vector<8x1xi32>
    %58 = vector.broadcast %57 : vector<8x1xi32> to vector<8x128xi32>
    %59 = arith.cmpi eq, %4, %58 : vector<8x128xi32>
    %cst_21 = arith.constant 0.000000e+00 : f32
    %60 = vector.broadcast %cst_21 : f32 to vector<8x128xf32>
    %61 = arith.select %59, %12, %60 : vector<8x128xi1>, vector<8x128xf32>
    %cst_22 = arith.constant dense<0.000000e+00> : vector<8xf32>
    %62 = vector.multi_reduction <add>, %61, %cst_22 [1] : vector<8x128xf32> to vector<8xf32>
    %63 = vector.shape_cast %62 : vector<8xf32> to vector<8x1xf32>
    %64 = vector.extract_strided_slice %1 {offsets = [0, 7], sizes = [8, 1], strides = [1, 1]} : vector<8x9xi32> to vector<8x1xi32>
    %65 = vector.broadcast %64 : vector<8x1xi32> to vector<8x128xi32>
    %66 = arith.cmpi eq, %4, %65 : vector<8x128xi32>
    %cst_23 = arith.constant 0.000000e+00 : f32
    %67 = vector.broadcast %cst_23 : f32 to vector<8x128xf32>
    %68 = arith.select %66, %12, %67 : vector<8x128xi1>, vector<8x128xf32>
    %cst_24 = arith.constant dense<0.000000e+00> : vector<8xf32>
    %69 = vector.multi_reduction <add>, %68, %cst_24 [1] : vector<8x128xf32> to vector<8xf32>
    %70 = vector.shape_cast %69 : vector<8xf32> to vector<8x1xf32>
    %71 = vector.extract_strided_slice %1 {offsets = [0, 8], sizes = [8, 1], strides = [1, 1]} : vector<8x9xi32> to vector<8x1xi32>
    %72 = vector.broadcast %71 : vector<8x1xi32> to vector<8x128xi32>
    %73 = arith.cmpi eq, %4, %72 : vector<8x128xi32>
    %cst_25 = arith.constant 0.000000e+00 : f32
    %74 = vector.broadcast %cst_25 : f32 to vector<8x128xf32>
    %75 = arith.select %73, %12, %74 : vector<8x128xi1>, vector<8x128xf32>
    %cst_26 = arith.constant dense<0.000000e+00> : vector<8xf32>
    %76 = vector.multi_reduction <add>, %75, %cst_26 [1] : vector<8x128xf32> to vector<8xf32>
    %77 = vector.shape_cast %76 : vector<8xf32> to vector<8x1xf32>
    %78 = tpu.concatenate %21, %28, %35, %42, %49, %56, %63, %70, %77 in 1 : vector<8x1xf32>, vector<8x1xf32>, vector<8x1xf32>, vector<8x1xf32>, vector<8x1xf32>, vector<8x1xf32>, vector<8x1xf32>, vector<8x1xf32>, vector<8x1xf32> -> vector<8x9xf32>
    %cst_27 = arith.constant 0.000000e+00 : f32
    %79 = vector.broadcast %cst_27 : f32 to vector<8x9xf32>
    %80 = arith.maximumf %78, %79 : vector<8x9xf32>
    %81 = math.absf %78 : vector<8x9xf32>
    %cst_28 = arith.constant 0.000000e+00 : f32
    %82 = vector.broadcast %cst_28 : f32 to vector<8x9xf32>
    %83 = arith.subf %82, %81 : vector<8x9xf32>
    %84 = math.exp %83 : vector<8x9xf32>
    %cst_29 = arith.constant 1.000000e+00 : f32
    %85 = vector.broadcast %cst_29 : f32 to vector<8x9xf32>
    %86 = arith.addf %85, %84 : vector<8x9xf32>
    %87 = math.log %86 : vector<8x9xf32>
    %88 = arith.addf %80, %87 : vector<8x9xf32>
    %cst_30 = arith.constant dense<0.000000e+00> : vector<8xf32>
    %89 = vector.multi_reduction <add>, %88, %cst_30 [1] : vector<8x9xf32> to vector<8xf32>
    %90 = vector.shape_cast %89 : vector<8xf32> to vector<8x1xf32>
    %c8_i32 = arith.constant 8 : i32
    %91 = arith.muli %arg0, %c8_i32 : i32
    %92 = tpu.iota {dimensions = array<i32: 0>} : vector<8x1xi32>
    %93 = vector.broadcast %91 : i32 to vector<8x1xi32>
    %94 = arith.addi %93, %92 : vector<8x1xi32>
    %c8_i32_31 = arith.constant 8 : i32
    %95 = vector.broadcast %c8_i32_31 : i32 to vector<8x1xi32>
    %96 = arith.cmpi slt, %94, %95 : vector<8x1xi32>
    %cst_32 = arith.constant 0.000000e+00 : f32
    %97 = vector.broadcast %cst_32 : f32 to vector<8x1xf32>
    %98 = arith.select %96, %90, %97 : vector<8x1xi1>, vector<8x1xf32>
    %cst_33 = arith.constant dense<0.000000e+00> : vector<1xf32>
    %99 = vector.multi_reduction <add>, %98, %cst_33 [0] : vector<8x1xf32> to vector<1xf32>
    %100 = vector.shape_cast %99 : vector<1xf32> to vector<1x1xf32>
    %101 = vector.shape_cast %100 : vector<1x1xf32> to vector<1x1xf32>
    %102 = vector.broadcast %101 : vector<1x1xf32> to vector<8x128xf32>
    %c0_34 = arith.constant 0 : index
    %c0_35 = arith.constant 0 : index
    %103 = vector.load %arg5[%c0_34, %c0_35] : memref<8x128xf32, #tpu.memory_space<vmem>>, vector<8x128xf32>
    tpu.vector_store %arg5[%c0_34, %c0_35], %102 {strides = array<i32>} : memref<8x128xf32, #tpu.memory_space<vmem>>, vector<8x128xf32>,
    return
  }
  func.func @transform_0(%arg0: i32) -> (i32, i32) {
    %c0_i32 = arith.constant 0 : i32
    %c0_i32_0 = arith.constant 0 : i32
    return %arg0, %c0_i32 : i32, i32
  }
  func.func @transform_1(%arg0: i32) -> (i32, i32) {
    %c0_i32 = arith.constant 0 : i32
    %c0_i32_0 = arith.constant 0 : i32
    return %arg0, %c0_i32 : i32, i32
  }
  func.func @transform_2(%arg0: i32) -> (i32, i32) {
    %c0_i32 = arith.constant 0 : i32
    %c0_i32_0 = arith.constant 0 : i32
    %c0_i32_1 = arith.constant 0 : i32
    return %c0_i32, %c0_i32_0 : i32, i32
  }
  func.func @transform_3(%arg0: i32) -> (i32, i32) {
    %c0_i32 = arith.constant 0 : i32
    %c0_i32_0 = arith.constant 0 : i32
    %c0_i32_1 = arith.constant 0 : i32
    return %c0_i32, %c0_i32_0 : i32, i32
  }
  func.func @transform_4(%arg0: i32) -> (i32, i32) {
    %c0_i32 = arith.constant 0 : i32
    %c0_i32_0 = arith.constant 0 : i32
    return %arg0, %c0_i32 : i32, i32
  }
}

</mosaic_0001>

<bundles_post_ra>
// kernel: tpu_custom_call.1
= control target key start
LH: loop header
LB: loop body
LE: loop exit
PB: predicated region body
PF: predicated region fallthrough
CT: control target
= control target key end

     0   :  { %9 = vsyncpa [#allocation3], 0  ;;  %s693_s0 = inlined_call_operand.vmem [shape: s32[8,1], index: 0, kind: input, shape index: {}]   ;;  %s694_s1 = inlined_call_operand.vmem [shape: s32[8,9], index: 1, kind: input, shape index: {}]   ;;  %s695_s2 = inlined_call_operand.hbm [shape: bf16[128,128], index: 2, kind: input, shape index: {}]   ;;  %s696_s3 = inlined_call_operand.hbm [shape: bf16[128,128], index: 3, kind: input, shape index: {}]   ;;  %s697_s4 = inlined_call_operand.hbm [shape: f32[8,128], index: 4, kind: output, shape index: {}]  }
   0x1   :  { %10 = vsyncpa [#allocation6], 0 }
   0x2   :  { %11 = vsyncpa [#allocation4], 0  ;;  %s586_s15 = smov [#allocation2]   ;;  %s514_s19 = scalar_lea.hbm %s695_s2, 1024 }
   0x3   :  { %s21_s16 = sshll.u32 %s586_s15, 4  ;;  %p515_p0 = scmp.ne.s32.totalorder %s695_s2, %s514_s19  ;;  %s22_s16 = int_to_ptr.vmem [resolvable:$true] %s21_s16 }
   0x4   :  { %p518_p1 = scmp.lt.u32.totalorder %s514_s19, %s695_s2 }
   0x6   :  { %p520_p2 = pnand %p518_p1, %p515_p0 }
   0x8   :  { %523 = shalt.err (!%p520_p2)
}
   0x9   :  { %s524_s24 = scalar_lea.vmem %s22_s16, 1024  ;;  %p529_p4 = scmp.lt.s32.totalorder %s22_s16, %s22_s16 }
   0xa   :  { %p525_p3 = scmp.ne.s32.totalorder %s22_s16, %s524_s24  ;;  %p530_p5 = scmp.lt.s32.totalorder %s524_s24, %s524_s24 }
   0xc   :  { %p531_p6 = por %p530_p5, %p529_p4 }
   0xe   :  { %p532_p7 = pnand %p531_p6, %p525_p3 }
  0x10   :  { %535 = shalt.err (!%p532_p7)
}
  0x11   :  { %s587_s25 = smov 64   ;;  %s588_s26 = smov 4  }
  0x12   :  { %27 = dma.hbm_to_vmem [thread:$0]  %s695_s2, 1024, %s22_s16, [#allocation3], %s587_s25, %s587_s25, %s588_s26  }
  0x13   :  { %s589_s29 = smov [#allocation5]   ;;  %s536_s7 = scalar_lea.hbm %s696_s3, 1024 }
  0x14   :  { %s33_s30 = sshll.u32 %s589_s29, 4  ;;  %p537_p8 = scmp.ne.s32.totalorder %s696_s3, %s536_s7  ;;  %s34_s30 = int_to_ptr.vmem [resolvable:$true] %s33_s30 }
  0x15   :  { %p540_p9 = scmp.lt.u32.totalorder %s536_s7, %s696_s3 }
  0x17   :  { %p542_p10 = pnand %p540_p9, %p537_p8 }
  0x19   :  { %545 = shalt.err (!%p542_p10)
}
  0x1a   :  { %s546_s12 = scalar_lea.vmem %s34_s30, 1024  ;;  %p551_p12 = scmp.lt.s32.totalorder %s34_s30, %s34_s30 }
  0x1b   :  { %p547_p11 = scmp.ne.s32.totalorder %s34_s30, %s546_s12  ;;  %p552_p13 = scmp.lt.s32.totalorder %s546_s12, %s546_s12 }
  0x1d   :  { %p553_p0 = por %p552_p13, %p551_p12 }
  0x1f   :  { %p554_p1 = pnand %p553_p0, %p547_p11 }
  0x21   :  { %557 = shalt.err (!%p554_p1)
}
  0x22   :  { %39 = dma.hbm_to_vmem [thread:$0]  %s696_s3, 1024, %s34_s30, [#allocation6], %s587_s25, %s587_s25, %s588_s26  }
  0x23   :  { %580 = dma.done.wait [#allocation3], 1024  }
  0x24   :  { %581 = vsyncadd [#allocation3], 4294966272 }
  0x25   :  { %582 = dma.done.wait [#allocation6], 1024  }
  0x26   :  { %583 = vsyncadd [#allocation6], 4294966272  ;;  %v590_v0 = vmov 0   ;;  %v591_v1 = vmov 0.0   ;;  %v47_v2 = vld [vmem:[%s693_s0] sm:$0xff]  ;;  %v494_v3 = vld [vmem:[#allocation2] sm:$0xff]   ;;  %v81_v19 = vlaneseq }
  0x27   :  { %484 = vset.pattern.permute.xlu0 %v590_v0  ;;  %427 = vmatprep.subr.bf16.mxu0 %v591_v1  ;;  %v658_v4 = vld [vmem:[%s694_s1] sm:$0xff]  ;;  %vm592_vm0 = vmmov 0   ;;  %v495_v5 = vld [vmem:[#allocation2 + $0x8] sm:$0xff]   ;;  %v502_v7 = vld [vmem:[#allocation5] sm:$0xff]   ;;  %v593_v22 = vmov 1.0|1.0  }
  0x28   :  { %447 = vmatprep.subr.bf16.mxu1 %v591_v1  ;;  %84 = vperm.xlu0 %484, %v47_v2   ;;  %v496_v6 = vld [vmem:[#allocation2 + $0x10] sm:$0xff]   ;;  %v503_v8 = vld [vmem:[#allocation5 + $0x8] sm:$0xff]   ;;  %v497_v9 = vld [vmem:[#allocation2 + $0x18] sm:$0xff]   ;;  %v661_v20 = vand.u32 127, %v81_v19  ;;  %v594_v24 = vmov 1   ;;  %v595_v25 = vmov 7  }
  0x29   :  { %443 = vmatprep.mubr.msk.bf16.mxu0 %vm592_vm0, %v591_v1  ;;  %463 = vmatprep.mubr.msk.bf16.mxu1 %vm592_vm0, %v591_v1  ;;  %v504_v10 = vld [vmem:[#allocation5 + $0x10] sm:$0xff]   ;;  %v498_v11 = vld [vmem:[#allocation2 + $0x20] sm:$0xff]   ;;  %v505_v12 = vld [vmem:[#allocation5 + $0x18] sm:$0xff]   ;;  %v596_v26 = vmov 2   ;;  %v597_v27 = vmov 8   ;;  %v598_v28 = vmov 3  }
  0x2a   :  { %428 = vmatpush3.bf16.msra.mxu0 %v494_v3  ;;  %448 = vmatpush3.bf16.msra.mxu1 %v502_v7  ;;  %v499_v13 = vld [vmem:[#allocation2 + $0x28] sm:$0xff]   ;;  %v506_v14 = vld [vmem:[#allocation5 + $0x20] sm:$0xff]   ;;  %v500_v15 = vld [vmem:[#allocation2 + $0x30] sm:$0xff]   ;;  %v599_v29 = vmov 4   ;;  %v600_v30 = vmov 5   ;;  %v601_v31 = vmov 6  }
  0x2b   :  { %429 = vmatprep.subr.bf16.mxu0 %v591_v1  ;;  %449 = vmatprep.subr.bf16.mxu1 %v591_v1  ;;  %v507_v16 = vld [vmem:[#allocation5 + $0x28] sm:$0xff]   ;;  %v501_v17 = vld [vmem:[#allocation2 + $0x38] sm:$0xff]   ;;  %v508_v18 = vld [vmem:[#allocation5 + $0x30] sm:$0xff]   ;;  %vm331_vm12 = vcmask 7168   ;;  %vm333_vm13 = vcmask 15360   ;;  %vm335_vm14 = vcmask 23552  }
  0x2c   :  { %268 = vperm.xlu0 %484, %v658_v4   ;;  %v509_v23 = vld [vmem:[#allocation5 + $0x38] sm:$0xff]   ;;  %485 = vset.pattern.permute.xlu1 %v594_v24  ;;  %vm337_vm15 = vcmask 31744   ;;  %vm339_vm0 = vcmask 39936   ;;  %s602_s0 = smov [#allocation7]  }
  0x2d   :  { %276 = vperm.xlu1 %485, %v658_v4   ;;  %s380_s1 = sshll.u32 %s602_s0, 4  ;;  %s381_s1 = int_to_ptr.vmem [resolvable:$true] %s380_s1 }
  0x2e   :  { %430 = vmatpush3.bf16.msra.mxu0 %v495_v5  ;;  %450 = vmatpush3.bf16.msra.mxu1 %v503_v8  ;;  %s558_s3 = scalar_lea.vmem %s381_s1, 128  ;;  %p563_p3 = scmp.lt.s32.totalorder %s381_s1, %s381_s1 }
  0x2f   :  { %431 = vmatprep.subr.bf16.mxu0 %v591_v1  ;;  %451 = vmatprep.subr.bf16.mxu1 %v591_v1  ;;  %p559_p2 = scmp.ne.s32.totalorder %s381_s1, %s558_s3  ;;  %p564_p4 = scmp.lt.s32.totalorder %s558_s3, %s558_s3 }
  0x30   :  { %491 = vset.pattern.permute.xlu0 %v595_v25 }
  0x31   :  { %318 = vperm.xlu0 %491, %v658_v4   ;;  %486 = vset.pattern.permute.xlu1 %v596_v26  ;;  %p565_p5 = por %p564_p4, %p563_p3 }
  0x32   :  { %432 = vmatpush3.bf16.msra.mxu0 %v496_v6  ;;  %452 = vmatpush3.bf16.msra.mxu1 %v504_v10 }
  0x33   :  { %433 = vmatprep.subr.bf16.mxu0 %v591_v1  ;;  %453 = vmatprep.subr.bf16.mxu1 %v591_v1  ;;  %p566_p6 = pnand %p565_p5, %p559_p2 }
  0x34   :  { %283 = vperm.xlu1 %486, %v658_v4  }
  0x35   :  { %493 = vset.pattern.permute.xlu0 %v597_v27 }
  0x36   :  { %434 = vmatpush3.bf16.msra.mxu0 %v497_v9  ;;  %454 = vmatpush3.bf16.msra.mxu1 %v505_v12 }
  0x37   :  { %435 = vmatprep.subr.bf16.mxu0 %v591_v1  ;;  %455 = vmatprep.subr.bf16.mxu1 %v591_v1 }
  0x38   :  { %487 = vset.pattern.permute.xlu1 %v598_v28 }
  0x39   :  { %290 = vperm.xlu1 %487, %v658_v4  }
  0x3a   :  { %436 = vmatpush3.bf16.msra.mxu0 %v498_v11  ;;  %456 = vmatpush3.bf16.msra.mxu1 %v506_v14 }
  0x3b   :  { %437 = vmatprep.subr.bf16.mxu0 %v591_v1  ;;  %457 = vmatprep.subr.bf16.mxu1 %v591_v1 }
  0x3d   :  { %488 = vset.pattern.permute.xlu1 %v599_v29 }
  0x3e   :  { %438 = vmatpush3.bf16.msra.mxu0 %v499_v13  ;;  %458 = vmatpush3.bf16.msra.mxu1 %v507_v16 }
  0x3f   :  { %439 = vmatprep.subr.bf16.mxu0 %v591_v1  ;;  %459 = vmatprep.subr.bf16.mxu1 %v591_v1 }
  0x40   :  { %297 = vperm.xlu1 %488, %v658_v4  }
  0x42   :  { %440 = vmatpush3.bf16.msra.mxu0 %v500_v15  ;;  %460 = vmatpush3.bf16.msra.mxu1 %v508_v18 }
  0x43   :  { %441 = vmatprep.subr.bf16.mxu0 %v591_v1  ;;  %461 = vmatprep.subr.bf16.mxu1 %v591_v1 }
  0x44   :  { %489 = vset.pattern.permute.xlu1 %v600_v30 }
  0x45   :  { %304 = vperm.xlu1 %489, %v658_v4  }
  0x46   :  { %442 = vmatpush3.bf16.msra.mxu0 %v501_v17  ;;  %462 = vmatpush3.bf16.msra.mxu1 %v509_v23 }
  0x49   :  { %490 = vset.pattern.permute.xlu1 %v601_v31 }
  0x4a   :  { %311 = vperm.xlu1 %490, %v658_v4  }
  0x4e   :  { %492 = vset.pattern.permute.xlu1 %v597_v27 }
  0x4f   :  { %325 = vperm.xlu1 %492, %v658_v4  }
  0xa7   :  { %v85_v21 = vpop.permute.xlu0 %84 }
  0xa8   :  { %vm86_vm1 = vcmp.eq.s32.totalorder %v661_v20, %v85_v21 }
  0xa9   :  { %vm399_vm2 = vmpackc.low %vm86_vm1, %vm86_vm1  ;;  %vm341_vm1 = vcmask 48128  }
  0xaa   :  { %444 = vmatmul.mubr.msk.bf16.vlgmr.msra.gmra.mrb[0].mxu0 %vm399_vm2, %v593_v22  ;;  %vm343_vm2 = vcmask 56320  }
  0xab   :  { %v269_v40 = vpop.permute.xlu0 %268 }
  0xac   :  { %v277_v37 = vpop.permute.xlu1 %276  ;;  %vm270_vm3 = vcmp.eq.s32.totalorder %v661_v20, %v269_v40 }
  0xad   :  { %vm278_vm4 = vcmp.eq.s32.totalorder %v661_v20, %v277_v37 }
  0xb0   :  { %v319_v54 = vpop.permute.xlu0 %318 }
  0xb1   :  { %vm320_vm10 = vcmp.eq.s32.totalorder %v661_v20, %v319_v54 }
  0xb3   :  { %v284_v38 = vpop.permute.xlu1 %283 }
  0xb4   :  { %vm285_vm6 = vcmp.eq.s32.totalorder %v661_v20, %v284_v38 }
  0xb8   :  { %v291_v39 = vpop.permute.xlu1 %290 }
  0xb9   :  { %vm292_vm7 = vcmp.eq.s32.totalorder %v661_v20, %v291_v39 }
  0xbf   :  { %v298_v42 = vpop.permute.xlu1 %297 }
  0xc0   :  { %vm299_vm5 = vcmp.eq.s32.totalorder %v661_v20, %v298_v42 }
  0xc4   :  { %v305_v50 = vpop.permute.xlu1 %304 }
  0xc5   :  { %vm306_vm8 = vcmp.eq.s32.totalorder %v661_v20, %v305_v50 }
  0xc9   :  { %v312_v52 = vpop.permute.xlu1 %311 }
  0xca   :  { %vm313_vm9 = vcmp.eq.s32.totalorder %v661_v20, %v312_v52 }
  0xce   :  { %v326_v56 = vpop.permute.xlu1 %325 }
  0xcf   :  { %vm327_vm11 = vcmp.eq.s32.totalorder %v661_v20, %v326_v56 }
 0x17d   :  { %v172_v32 = vpop.f32.mrb[0].mxu0 }
 0x17e   :  { %v178_v33 = vpack.c.bf16 %v172_v32, %v172_v32  ;;  %v445_v34 = vpop.f32.mrb[1].mxu0 }
 0x17f   :  { %v175_v35 = vpop.f32.mrb[2].mxu0 }
 0x180   :  { %v446_v36 = vpop.f32.mrb[3].mxu0  ;;  %464 = vmatmul.mubr.bf16.vlgmr.msra.gmra.mrb[0].mxu1 %v178_v33 }
 0x253   :  { %v261_v41 = vpop.f32.mrb[0].mxu1 }
 0x254   :  { %v465_v43 = vpop.f32.mrb[1].mxu1  ;;  %v279_v44 = vsel %vm278_vm4, %v261_v41, 0.0  ;;  %v271_v45 = vsel %vm270_vm3, %v261_v41, 0.0  ;;  %v300_v48 = vsel %vm299_vm5, %v261_v41, 0.0  ;;  %v286_v49 = vsel %vm285_vm6, %v261_v41, 0.0 }
 0x255   :  { %280 = vadd.xlane.f32.xlu0 %v279_v44  ;;  %v264_v46 = vpop.f32.mrb[2].mxu1  ;;  %272 = vadd.xlane.f32.xlu1 %v271_v45  ;;  %v293_v51 = vsel %vm292_vm7, %v261_v41, 0.0  ;;  %v307_v53 = vsel %vm306_vm8, %v261_v41, 0.0  ;;  %v314_v55 = vsel %vm313_vm9, %v261_v41, 0.0  ;;  %v321_v57 = vsel %vm320_vm10, %v261_v41, 0.0 }
 0x256   :  { %v466_v47 = vpop.f32.mrb[3].mxu1  ;;  %v328_v58 = vsel %vm327_vm11, %v261_v41, 0.0  ;;  %vm345_vm3 = vcmask 64512   ;;  %vm356_vm4 = vcmask 72704  }
 0x259   :  { %301 = vadd.xlane.f32.xlu0 %v300_v48  ;;  %287 = vadd.xlane.f32.xlu1 %v286_v49 }
 0x25d   :  { %294 = vadd.xlane.f32.xlu1 %v293_v51 }
 0x261   :  { %308 = vadd.xlane.f32.xlu1 %v307_v53 }
 0x265   :  { %315 = vadd.xlane.f32.xlu1 %v314_v55 }
 0x269   :  { %322 = vadd.xlane.f32.xlu1 %v321_v57 }
 0x26d   :  { %329 = vadd.xlane.f32.xlu1 %v328_v58 }
 0x2e2   :  { %v273_v59 = vpop.xlane.xlu1 %272  ;;  %v281_v0 = vpop.xlane.xlu0 %280 }
 0x2e3   :  { %v274_v62 = vsub.f32 0.0, %v273_v59 }
 0x2e5   :  { %v332_v1 = vsel %vm331_vm12, %v274_v62, %v281_v0 }
 0x2e6   :  { %v288_v60 = vpop.xlane.xlu1 %287  ;;  %v302_v5 = vpop.xlane.xlu0 %301 }
 0x2e7   :  { %v334_v3 = vsel %vm333_vm13, %v332_v1, %v288_v60 }
 0x2ea   :  { %v295_v61 = vpop.xlane.xlu1 %294 }
 0x2eb   :  { %v336_v4 = vsel %vm335_vm14, %v334_v3, %v295_v61 }
 0x2ec   :  { %v338_v7 = vsel %vm337_vm15, %v336_v4, %v302_v5 }
 0x2ee   :  { %v309_v63 = vpop.xlane.xlu1 %308 }
 0x2ef   :  { %v340_v8 = vsel %vm339_vm0, %v338_v7, %v309_v63 }
 0x2f2   :  { %v316_v2 = vpop.xlane.xlu1 %315 }
 0x2f3   :  { %v342_v9 = vsel %vm341_vm1, %v340_v8, %v316_v2 }
 0x2f6   :  { %v323_v6 = vpop.xlane.xlu1 %322 }
 0x2f7   :  { %v344_v10 = vsel %vm343_vm2, %v342_v9, %v323_v6 }
 0x2fa   :  { %v330_v11 = vpop.xlane.xlu1 %329 }
 0x2fb   :  { %v346_v12 = vsel %vm345_vm3, %v344_v10, %v330_v11 }
 0x2fc   :  { %v348_v13 = vand.u32 2147483647, %v346_v12  ;;  %v347_v19 = vmax.f32 %v346_v12, 0.0 }
 0x2fe   :  { %v349_v14 = vsub.f32 0.0, %v348_v13 }
 0x300   :  { %v350_v15 = vmul.f32 1.442695, %v349_v14 }
 0x302   :  { %510 = vpow2.f32 %v350_v15 }
 0x30c   :  { %v511_v16 = vpop.eup %510 }
 0x30d   :  { %v352_v17 = vadd.f32 1.0, %v511_v16 }
 0x30f   :  { %512 = vlog2.f32 %v352_v17 }
 0x319   :  { %v513_v18 = vpop.eup %512 }
 0x31a   :  { %v354_v20 = vmul.f32 0.6931472, %v513_v18 }
 0x31c   :  { %v355_v21 = vadd.f32 %v354_v20, %v347_v19 }
 0x31e   :  { %v357_v22 = vsel %vm356_vm4, %v355_v21, 0.0 }
 0x31f   :  { %358 = vadd.xlane.f32.xlu1 %v357_v22 }
 0x3ac   :  { %v359_v23 = vpop.xlane.xlu1 %358 }
 0x3ad   :  { %v367_v24 = vrot.slane %v359_v23, 4 }
 0x3af   :  { %v368_v25 = vadd.f32 %v367_v24, %v359_v23 }
 0x3b1   :  { %v369_v26 = vrot.slane %v368_v25, 2 }
 0x3b3   :  { %v370_v27 = vadd.f32 %v369_v26, %v368_v25 }
 0x3b5   :  { %v371_v28 = vrot.slane %v370_v27, 1 }
 0x3b7   :  { %v372_v29 = vadd.f32 %v371_v28, %v370_v27 }
 0x3b9   :  { %373 = vst [vmem:[#allocation7] sm:$0xff] %v372_v29 }
 0x3ba   :  { %569 = shalt.err (!%p566_p6)
}
 0x3bb   :  { %s570_s20 = scalar_lea.hbm %s697_s4, 128 }
 0x3bc   :  { %p571_p7 = scmp.ne.s32.totalorder %s697_s4, %s570_s20  ;;  %p574_p8 = scmp.lt.u32.totalorder %s570_s20, %s697_s4 }
 0x3be   :  { %p576_p9 = pnand %p574_p8, %p571_p7 }
 0x3c0   :  { %579 = shalt.err (!%p576_p9)
}
 0x3c1   :  { %383 = dma.vmem_to_hbm [thread:$0]  %s381_s1, 128, %s697_s4, [#allocation4]  }
 0x3c2   :  { %584 = dma.done.wait [#allocation4], 128  }
 0x3c3   :  { %585 = vsyncadd [#allocation4], 4294967168 }
 0x3c4   :  { %387 = vsyncpa [#allocation3], 1 }
 0x3c5   :  { %388 = vsyncpa [#allocation6], 1 }
 0x3c6   :  { %389 = vsyncpa [#allocation4], 1 }

</bundles_post_ra>
